<compile_context>
chip_gen: v5e
topology: v5e:2x2
jax: 0.10.0
libtpu: 0.0.40
codegen_flags: <defaults>
</compile_context>

<pallas_src>
import functools

import jax
import jax.numpy as jnp
from jax.experimental import pallas as pl
from jax.experimental.pallas import tpu as pltpu


# ---------------------------------------------------------------------------
# Kernels
# ---------------------------------------------------------------------------
def _ff_resident_kernel(x_ref, g_ref, beta_ref, w1_ref, b1_ref, w2_ref, b2_ref,
                        o_ref, *, eps):
    """1-D grid over row tiles; W1/W2 fully VMEM-resident (constant index_map)."""
    # LayerNorm over last dim in f32 (v5e has no bf16 VPU/EUP).
    # Padding rows of a partial last tile may hold garbage; they are computed
    # but discarded on writeback (rows are independent) -- benign.
    x = x_ref[...].astype(jnp.float32)
    mean = jnp.mean(x, axis=-1, keepdims=True)
    xc = x - mean
    var = jnp.mean(xc * xc, axis=-1, keepdims=True)
    xn = xc * jax.lax.rsqrt(var + eps)
    xn = xn * g_ref[...].astype(jnp.float32) + beta_ref[...].astype(jnp.float32)

    # Linear1 -> ReLU -> Linear2 (bf16 MXU operands, f32 accumulation).
    h = jnp.dot(xn.astype(w1_ref.dtype), w1_ref[...],
                preferred_element_type=jnp.float32)
    h = jnp.maximum(h + b1_ref[...].astype(jnp.float32), 0.0)
    # TODO(synk): nn.Dropout omitted (identity in eval / inference mode).
    out = jnp.dot(h.astype(w2_ref.dtype), w2_ref[...],
                  preferred_element_type=jnp.float32)
    o_ref[...] = (out + b2_ref[...].astype(jnp.float32)).astype(o_ref.dtype)


def _ff_stream_kernel(x_ref, g_ref, beta_ref, w1_ref, b1_ref, w2_ref, b2_ref,
                      o_ref, xn_ref, *maybe_acc, eps, acc_into_out):
    """2-D grid (row tiles x d_inner tiles); W1/W2 streamed in K slices."""
    k = pl.program_id(1)
    # When the output dtype is f32 we accumulate straight into the (resident)
    # output block; otherwise into a dedicated f32 scratch.
    acc_ref = o_ref if acc_into_out else maybe_acc[0]

    # ---- LayerNorm (f32): compute once per row tile, cache as bf16 ----------
    @pl.when(k == 0)
    def _():
        x = x_ref[...].astype(jnp.float32)
        mean = jnp.mean(x, axis=-1, keepdims=True)
        xc = x - mean
        var = jnp.mean(xc * xc, axis=-1, keepdims=True)
        xn = xc * jax.lax.rsqrt(var + eps)
        xn = xn * g_ref[...].astype(jnp.float32) + beta_ref[...].astype(jnp.float32)
        xn_ref[...] = xn.astype(xn_ref.dtype)
        acc_ref[...] = jnp.zeros_like(acc_ref)

    # ---- Linear1 slice + ReLU, then Linear2 slice accumulation --------------
    h = jnp.dot(xn_ref[...], w1_ref[...], preferred_element_type=jnp.float32)
    h = jnp.maximum(h + b1_ref[...].astype(jnp.float32), 0.0)
    # TODO(synk): nn.Dropout omitted (identity in eval / inference mode).
    acc_ref[...] += jnp.dot(h.astype(w2_ref.dtype), w2_ref[...],
                            preferred_element_type=jnp.float32)

    # ---- finalize: add output bias and store ---------------------------------
    @pl.when(k == pl.num_programs(1) - 1)
    def _():
        o_ref[...] = (acc_ref[...] + b2_ref[...].astype(jnp.float32)).astype(o_ref.dtype)


# ---------------------------------------------------------------------------
# Helpers
# ---------------------------------------------------------------------------
def _round_up(x, m):
    return ((x + m - 1) // m) * m


def _pick_inner_tile(d_inner, tk_req):
    """Largest multiple of 128 <= tk_req that divides d_inner, else d_inner."""
    if tk_req >= d_inner:
        return d_inner
    cand = (tk_req // 128) * 128
    while cand >= 128:
        if d_inner % cand == 0:
            return cand
        cand -= 128
    return d_inner


def _vmem_capacity_bytes():
    try:
        return int(pltpu.get_tpu_info().vmem_capacity_bytes)
    except Exception:
        return 64 * 1024 * 1024          # conservative (v7x per-TC VMEM)


# ---------------------------------------------------------------------------
# Wrapper
# ---------------------------------------------------------------------------
def positionwise_ff(inp, gamma, beta, w1, b1, w2, b2, *, eps=1e-5,
                    tm=None, tk=None, mxu_dtype=jnp.bfloat16,
                    force_streaming=False):
    """inp: (seq, batch, d_model). w1: (d_model, d_inner), w2: (d_inner, d_model).

    Pass w1/w2 already cast to `mxu_dtype` (bf16) at parameter-load time; the
    in-wrapper cast is a no-op in that case (avoids an extra full-weight HBM
    pass per call).
    """
    seq, batch, d_model = inp.shape
    d_inner = w1.shape[1]
    n = seq * batch
    x2d = inp.reshape(n, d_model)

    out_dtype = inp.dtype
    in_b = jnp.dtype(inp.dtype).itemsize
    out_b = jnp.dtype(out_dtype).itemsize
    w_b = jnp.dtype(mxu_dtype).itemsize

    # ---- per-generation VMEM budgeting (v5e/v6e 128 MiB, v7x 64 MiB per TC) --
    cap = _vmem_capacity_bytes()
    budget = cap * 3 // 4                               # headroom for compiler
    vmem_limit = int(min(cap * 7 // 8, 120 * 1024 * 1024))

    w1m = w1 if w1.dtype == mxu_dtype else w1.astype(mxu_dtype)
    w2m = w2 if w2.dtype == mxu_dtype else w2.astype(mxu_dtype)

    gamma2 = gamma.reshape(1, d_model).astype(jnp.float32)
    beta2 = beta.reshape(1, d_model).astype(jnp.float32)
    b1_2 = b1.reshape(1, d_inner).astype(jnp.float32)
    b2_2 = b2.reshape(1, d_model).astype(jnp.float32)

    # ----------------------------------------------------------------------
    # Path A: fully resident weights (1-D row grid).
    # ----------------------------------------------------------------------
    def resident_bytes(tm_):
        wbytes = 2 * 2 * d_model * d_inner * w_b            # W1+W2 (2-buffered)
        xbytes = 2 * tm_ * d_model * in_b                    # x tiles (dbl-buf)
        obytes = 2 * tm_ * d_model * out_b                   # out tiles (dbl-buf)
        inter = tm_ * d_inner * 4 + 2 * tm_ * d_model * 4    # f32 hidden + LN tmp
        return wbytes + xbytes + obytes + inter + 4 * (d_model + d_inner) * 4

    tm_res = max(16, min(_round_up(512 if tm is None else tm, 16),
                         _round_up(n, 16)))
    # Keep >= 2 row tiles when possible so both v7x TensorCores get work.
    tm_res = min(tm_res, max(16, _round_up(-(-n // 2), 16)))
    while tm_res > 16 and resident_bytes(tm_res) > budget:
        tm_res = max(16, _round_up(tm_res // 2, 16))

    use_resident = (not force_streaming) and resident_bytes(tm_res) <= budget

    if use_resident:
        grid = (pl.cdiv(n, tm_res),)
        out2d = pl.pallas_call(
            functools.partial(_ff_resident_kernel, eps=eps),
            out_shape=jax.ShapeDtypeStruct((n, d_model), out_dtype),
            grid_spec=pltpu.PrefetchScalarGridSpec(
                num_scalar_prefetch=0,
                grid=grid,
                in_specs=[
                    pl.BlockSpec((tm_res, d_model), lambda i: (i, 0)),    # x rows
                    pl.BlockSpec((1, d_model), lambda i: (0, 0)),         # gamma
                    pl.BlockSpec((1, d_model), lambda i: (0, 0)),         # beta
                    pl.BlockSpec((d_model, d_inner), lambda i: (0, 0)),   # W1 resident
                    pl.BlockSpec((1, d_inner), lambda i: (0, 0)),         # b1
                    pl.BlockSpec((d_inner, d_model), lambda i: (0, 0)),   # W2 resident
                    pl.BlockSpec((1, d_model), lambda i: (0, 0)),         # b2
                ],
                out_specs=pl.BlockSpec((tm_res, d_model), lambda i: (i, 0)),
            ),
            compiler_params=pltpu.CompilerParams(
                dimension_semantics=("parallel",),
                vmem_limit_bytes=vmem_limit,
            ),
        )(x2d, gamma2, beta2, w1m, b1_2, w2m, b2_2)
        return out2d.reshape(seq, batch, d_model)

    # ----------------------------------------------------------------------
    # Path B: streamed weights (2-D grid; reduction axis last).
    # ----------------------------------------------------------------------
    acc_into_out = (jnp.dtype(out_dtype) == jnp.dtype(jnp.float32))

    def stream_bytes(tm_, tk_):
        wbytes = 4 * d_model * tk_ * w_b                     # W1+W2 slices, dbl-buf
        xbytes = 2 * tm_ * d_model * in_b
        obytes = 2 * tm_ * d_model * out_b
        xnbytes = tm_ * d_model * w_b                        # cached LN(x)
        accbytes = 0 if acc_into_out else tm_ * d_model * 4
        inter = tm_ * tk_ * 4                                # f32 hidden slice
        return wbytes + xbytes + obytes + xnbytes + accbytes + inter

    tm_s = max(16, min(_round_up(1024 if tm is None else tm, 16),
                       _round_up(n, 16)))
    tk_s = _pick_inner_tile(d_inner, 2048 if tk is None else tk)
    while stream_bytes(tm_s, tk_s) > budget:
        new_tk = _pick_inner_tile(d_inner, max(128, tk_s // 2))
        if new_tk < tk_s:
            tk_s = new_tk
        elif tm_s > 16:
            tm_s = max(16, _round_up(tm_s // 2, 16))
        else:
            break

    grid = (pl.cdiv(n, tm_s), d_inner // tk_s)
    scratch_shapes = [pltpu.VMEM((tm_s, d_model), mxu_dtype)]  # cached LN(x)
    if not acc_into_out:
        scratch_shapes.append(pltpu.VMEM((tm_s, d_model), jnp.float32))

    out2d = pl.pallas_call(
        functools.partial(_ff_stream_kernel, eps=eps, acc_into_out=acc_into_out),
        out_shape=jax.ShapeDtypeStruct((n, d_model), out_dtype),
        grid_spec=pltpu.PrefetchScalarGridSpec(
            num_scalar_prefetch=0,
            grid=grid,
            in_specs=[
                pl.BlockSpec((tm_s, d_model), lambda i, k: (i, 0)),   # x rows
                pl.BlockSpec((1, d_model), lambda i, k: (0, 0)),      # gamma
                pl.BlockSpec((1, d_model), lambda i, k: (0, 0)),      # beta
                # NOTE: add pipeline_mode=pl.Buffered(3) to the two weight
                # specs below only if profiling shows exposed weight DMA at
                # row-tile boundaries (compute-bound case).
                pl.BlockSpec((d_model, tk_s), lambda i, k: (0, k)),   # W1 slice
                pl.BlockSpec((1, tk_s), lambda i, k: (0, k)),         # b1 slice
                pl.BlockSpec((tk_s, d_model), lambda i, k: (k, 0)),   # W2 slice
                pl.BlockSpec((1, d_model), lambda i, k: (0, 0)),      # b2
            ],
            out_specs=pl.BlockSpec((tm_s, d_model), lambda i, k: (i, 0)),
            scratch_shapes=scratch_shapes,
        ),
        compiler_params=pltpu.CompilerParams(
            dimension_semantics=("parallel", "arbitrary"),
            vmem_limit_bytes=vmem_limit,
        ),
    )(x2d, gamma2, beta2, w1m, b1_2, w2m, b2_2)
    return out2d.reshape(seq, batch, d_model)


# ---------------------------------------------------------------------------
# Reference (matches the kernel's precision choices: f32 LN, bf16 matmul
# operands, f32 accumulation, f32 bias adds).
# ---------------------------------------------------------------------------
def reference_ff(inp, gamma, beta, w1, b1, w2, b2, eps=1e-5,
                 mxu_dtype=jnp.bfloat16):
    x = inp.astype(jnp.float32)
    mean = jnp.mean(x, axis=-1, keepdims=True)
    var = jnp.mean((x - mean) ** 2, axis=-1, keepdims=True)
    xn = (x - mean) / jnp.sqrt(var + eps) * gamma + beta
    xn2 = xn.reshape(-1, w1.shape[0]).astype(mxu_dtype)
    h = jnp.dot(xn2, w1.astype(mxu_dtype),
                preferred_element_type=jnp.float32) + b1
    h = jnp.maximum(h, 0.0)
    out = jnp.dot(h.astype(mxu_dtype), w2.astype(mxu_dtype),
                  preferred_element_type=jnp.float32) + b2
    return out.reshape(inp.shape).astype(inp.dtype)


if __name__ == "__main__":
    # small shapes: seq=8, batch=2, d_model=32, d_inner=64
    seq, batch, d_model, d_inner = 8, 2, 32, 64

    key = jax.random.PRNGKey(0)
    k_inp, k_w1, k_b1, k_w2, k_b2 = jax.random.split(key, 5)

    inp = jax.random.normal(k_inp, (seq, batch, d_model), dtype=jnp.float32)

    # PyTorch Linear weight is (out, in); stored transposed as (in, out).
    w1 = jax.random.normal(k_w1, (d_model, d_inner), dtype=jnp.float32) * 0.05
    b1 = jax.random.normal(k_b1, (d_inner,), dtype=jnp.float32) * 0.05
    w2 = jax.random.normal(k_w2, (d_inner, d_model), dtype=jnp.float32) * 0.05
    b2 = jax.random.normal(k_b2, (d_model,), dtype=jnp.float32) * 0.05
    gamma = jnp.ones((d_model,), dtype=jnp.float32)   # LayerNorm weight init
    beta = jnp.zeros((d_model,), dtype=jnp.float32)   # LayerNorm bias init

    # Hoisted weight cast (done once at "parameter load", not per call).
    w1_bf16 = w1.astype(jnp.bfloat16)
    w2_bf16 = w2.astype(jnp.bfloat16)

    ref = reference_ff(inp, gamma, beta, w1, b1, w2, b2)

    # Path A: resident weights (default for these sizes).
    out_res = positionwise_ff(inp, gamma, beta, w1_bf16, b1, w2_bf16, b2)
    out_res = jax.block_until_ready(out_res)
    assert out_res.shape == (seq, batch, d_model)
    assert jnp.allclose(out_res, ref, atol=2e-3, rtol=2e-3), "resident path mismatch"

    # Path B: streamed-weights fallback (forced, to exercise both code paths).
    out_str = positionwise_ff(inp, gamma, beta, w1_bf16, b1, w2_bf16, b2,
                              force_streaming=True)
    out_str = jax.block_until_ready(out_str)
    assert out_str.shape == (seq, batch, d_model)
    assert jnp.allclose(out_str, ref, atol=2e-3, rtol=2e-3), "streaming path mismatch"

    print("KERNEL_OK")
</pallas_src>

<mosaic_0001>
module attributes {stable_mosaic.version = 11 : i64} {
  func.func @_ff_resident_kernel(%arg0: i32, %arg1: memref<16x32xf32, #tpu.memory_space<vmem>>, %arg2: memref<1x32xf32, #tpu.memory_space<vmem>>, %arg3: memref<1x32xf32, #tpu.memory_space<vmem>>, %arg4: memref<32x64xbf16, #tpu.memory_space<vmem>>, %arg5: memref<1x64xf32, #tpu.memory_space<vmem>>, %arg6: memref<64x32xbf16, #tpu.memory_space<vmem>>, %arg7: memref<1x32xf32, #tpu.memory_space<vmem>>, %arg8: memref<16x32xf32, #tpu.memory_space<vmem>>) attributes {dimension_semantics = [#tpu.dimension_semantics<parallel>], iteration_bounds = array<i64: 1>, scalar_prefetch = 0 : i64, scratch_operands = 0 : i64, tpu.core_type = #tpu.core_type<tc>, window_params = [{transform_indices = @transform_0, window_bounds = array<i64: 16, 32>}, {pipeline_mode = #tpu.pipeline_mode<synchronous>, transform_indices = @transform_1, window_bounds = array<i64: 1, 32>}, {pipeline_mode = #tpu.pipeline_mode<synchronous>, transform_indices = @transform_2, window_bounds = array<i64: 1, 32>}, {pipeline_mode = #tpu.pipeline_mode<synchronous>, transform_indices = @transform_3, window_bounds = array<i64: 32, 64>}, {pipeline_mode = #tpu.pipeline_mode<synchronous>, transform_indices = @transform_4, window_bounds = array<i64: 1, 64>}, {pipeline_mode = #tpu.pipeline_mode<synchronous>, transform_indices = @transform_5, window_bounds = array<i64: 64, 32>}, {pipeline_mode = #tpu.pipeline_mode<synchronous>, transform_indices = @transform_6, window_bounds = array<i64: 1, 32>}, {transform_indices = @transform_7, window_bounds = array<i64: 16, 32>}]} {
    %c0 = arith.constant 0 : index
    %c0_0 = arith.constant 0 : index
    %0 = vector.load %arg1[%c0, %c0_0] : memref<16x32xf32, #tpu.memory_space<vmem>>, vector<16x32xf32>
    %cst = arith.constant dense<0.000000e+00> : vector<16xf32>
    %1 = vector.multi_reduction <add>, %0, %cst [1] : vector<16x32xf32> to vector<16xf32>
    %2 = vector.shape_cast %1 : vector<16xf32> to vector<16x1xf32>
    %cst_1 = arith.constant 3.200000e+01 : f32
    %3 = vector.broadcast %cst_1 : f32 to vector<16x1xf32>
    %4 = arith.divf %2, %3 : vector<16x1xf32>
    %5 = vector.broadcast %4 : vector<16x1xf32> to vector<16x32xf32>
    %6 = arith.subf %0, %5 : vector<16x32xf32>
    %7 = arith.mulf %6, %6 : vector<16x32xf32>
    %cst_2 = arith.constant dense<0.000000e+00> : vector<16xf32>
    %8 = vector.multi_reduction <add>, %7, %cst_2 [1] : vector<16x32xf32> to vector<16xf32>
    %9 = vector.shape_cast %8 : vector<16xf32> to vector<16x1xf32>
    %cst_3 = arith.constant 3.200000e+01 : f32
    %10 = vector.broadcast %cst_3 : f32 to vector<16x1xf32>
    %11 = arith.divf %9, %10 : vector<16x1xf32>
    %cst_4 = arith.constant 9.99999974E-6 : f32
    %12 = vector.broadcast %cst_4 : f32 to vector<16x1xf32>
    %13 = arith.addf %11, %12 : vector<16x1xf32>
    %14 = math.rsqrt %13 : vector<16x1xf32>
    %15 = vector.broadcast %14 : vector<16x1xf32> to vector<16x32xf32>
    %16 = arith.mulf %6, %15 : vector<16x32xf32>
    %c0_5 = arith.constant 0 : index
    %c0_6 = arith.constant 0 : index
    %17 = vector.load %arg2[%c0_5, %c0_6] : memref<1x32xf32, #tpu.memory_space<vmem>>, vector<1x32xf32>
    %18 = vector.broadcast %17 : vector<1x32xf32> to vector<16x32xf32>
    %19 = arith.mulf %16, %18 : vector<16x32xf32>
    %c0_7 = arith.constant 0 : index
    %c0_8 = arith.constant 0 : index
    %20 = vector.load %arg3[%c0_7, %c0_8] : memref<1x32xf32, #tpu.memory_space<vmem>>, vector<1x32xf32>
    %21 = vector.broadcast %20 : vector<1x32xf32> to vector<16x32xf32>
    %22 = arith.addf %19, %21 : vector<16x32xf32>
    %23 = arith.truncf %22 : vector<16x32xf32> to vector<16x32xbf16>
    %c0_9 = arith.constant 0 : index
    %c0_10 = arith.constant 0 : index
    %24 = vector.load %arg4[%c0_9, %c0_10] : memref<32x64xbf16, #tpu.memory_space<vmem>>, vector<32x64xbf16>
    %cst_11 = arith.constant dense<0.000000e+00> : vector<16x64xf32>
    %25 = tpu.matmul %23, %24, %cst_11 {dimension_numbers = #tpu.dot_dimension_numbers<[1], [0], [0], [1], [0, 0, 1, 1], [], []>} : vector<16x32xbf16>, vector<32x64xbf16>, vector<16x64xf32> -> vector<16x64xf32>
    %c0_12 = arith.constant 0 : index
    %c0_13 = arith.constant 0 : index
    %26 = vector.load %arg5[%c0_12, %c0_13] : memref<1x64xf32, #tpu.memory_space<vmem>>, vector<1x64xf32>
    %27 = vector.broadcast %26 : vector<1x64xf32> to vector<16x64xf32>
    %28 = arith.addf %25, %27 : vector<16x64xf32>
    %cst_14 = arith.constant 0.000000e+00 : f32
    %29 = vector.broadcast %cst_14 : f32 to vector<16x64xf32>
    %30 = arith.maximumf %28, %29 : vector<16x64xf32>
    %31 = arith.truncf %30 : vector<16x64xf32> to vector<16x64xbf16>
    %c0_15 = arith.constant 0 : index
    %c0_16 = arith.constant 0 : index
    %32 = vector.load %arg6[%c0_15, %c0_16] : memref<64x32xbf16, #tpu.memory_space<vmem>>, vector<64x32xbf16>
    %cst_17 = arith.constant dense<0.000000e+00> : vector<16x32xf32>
    %33 = tpu.matmul %31, %32, %cst_17 {dimension_numbers = #tpu.dot_dimension_numbers<[1], [0], [0], [1], [0, 0, 1, 1], [], []>} : vector<16x64xbf16>, vector<64x32xbf16>, vector<16x32xf32> -> vector<16x32xf32>
    %c0_18 = arith.constant 0 : index
    %c0_19 = arith.constant 0 : index
    %34 = vector.load %arg7[%c0_18, %c0_19] : memref<1x32xf32, #tpu.memory_space<vmem>>, vector<1x32xf32>
    %35 = vector.broadcast %34 : vector<1x32xf32> to vector<16x32xf32>
    %36 = arith.addf %33, %35 : vector<16x32xf32>
    %c0_20 = arith.constant 0 : index
    %c0_21 = arith.constant 0 : index
    %37 = vector.load %arg8[%c0_20, %c0_21] : memref<16x32xf32, #tpu.memory_space<vmem>>, vector<16x32xf32>
    tpu.vector_store %arg8[%c0_20, %c0_21], %36 {strides = array<i32>} : memref<16x32xf32, #tpu.memory_space<vmem>>, vector<16x32xf32>,
    return
  }
  func.func @transform_0(%arg0: i32) -> (i32, i32) {
    %c0_i32 = arith.constant 0 : i32
    %c0_i32_0 = arith.constant 0 : i32
    return %arg0, %c0_i32 : i32, i32
  }
  func.func @transform_1(%arg0: i32) -> (i32, i32) {
    %c0_i32 = arith.constant 0 : i32
    %c0_i32_0 = arith.constant 0 : i32
    %c0_i32_1 = arith.constant 0 : i32
    return %c0_i32, %c0_i32_0 : i32, i32
  }
  func.func @transform_2(%arg0: i32) -> (i32, i32) {
    %c0_i32 = arith.constant 0 : i32
    %c0_i32_0 = arith.constant 0 : i32
    %c0_i32_1 = arith.constant 0 : i32
    return %c0_i32, %c0_i32_0 : i32, i32
  }
  func.func @transform_3(%arg0: i32) -> (i32, i32) {
    %c0_i32 = arith.constant 0 : i32
    %c0_i32_0 = arith.constant 0 : i32
    %c0_i32_1 = arith.constant 0 : i32
    return %c0_i32, %c0_i32_0 : i32, i32
  }
  func.func @transform_4(%arg0: i32) -> (i32, i32) {
    %c0_i32 = arith.constant 0 : i32
    %c0_i32_0 = arith.constant 0 : i32
    %c0_i32_1 = arith.constant 0 : i32
    return %c0_i32, %c0_i32_0 : i32, i32
  }
  func.func @transform_5(%arg0: i32) -> (i32, i32) {
    %c0_i32 = arith.constant 0 : i32
    %c0_i32_0 = arith.constant 0 : i32
    %c0_i32_1 = arith.constant 0 : i32
    return %c0_i32, %c0_i32_0 : i32, i32
  }
  func.func @transform_6(%arg0: i32) -> (i32, i32) {
    %c0_i32 = arith.constant 0 : i32
    %c0_i32_0 = arith.constant 0 : i32
    %c0_i32_1 = arith.constant 0 : i32
    return %c0_i32, %c0_i32_0 : i32, i32
  }
  func.func @transform_7(%arg0: i32) -> (i32, i32) {
    %c0_i32 = arith.constant 0 : i32
    %c0_i32_0 = arith.constant 0 : i32
    return %arg0, %c0_i32 : i32, i32
  }
}

</mosaic_0001>

<bundles_post_ra>
// kernel: tpu_custom_call.1
= control target key start
LH: loop header
LB: loop body
LE: loop exit
PB: predicated region body
PF: predicated region fallthrough
CT: control target
= control target key end

     0   :  { %vm30_vm0 = vcmask 261120   ;;  %s371_s0 = inlined_call_operand.vmem [shape: f32[16,32], index: 0, kind: input, shape index: {}]   ;;  %s372_s1 = inlined_call_operand.vmem [shape: f32[1,32], index: 1, kind: input, shape index: {}]   ;;  %s373_s2 = inlined_call_operand.vmem [shape: f32[1,32], index: 2, kind: input, shape index: {}]   ;;  %s374_s3 = inlined_call_operand.vmem [shape: bf16[32,64], index: 3, kind: input, shape index: {}]   ;;  %s375_s4 = inlined_call_operand.vmem [shape: f32[1,64], index: 4, kind: input, shape index: {}]   ;;  %s376_s5 = inlined_call_operand.vmem [shape: bf16[64,32], index: 5, kind: input, shape index: {}]   ;;  %s377_s6 = inlined_call_operand.vmem [shape: f32[1,32], index: 6, kind: input, shape index: {}]   ;;  %s378_s7 = inlined_call_operand.hbm [shape: f32[16,32], index: 7, kind: output, shape index: {}]  }
   0x1   :  { %v28_v0 = vld [vmem:[%s371_s0] sm:$0xff] }
   0x2   :  { %v31_v1 = vsel %vm30_vm0, %v28_v0, 0.0 }
   0x3   :  { %32 = vadd.xlane.f32.xlu0 %v31_v1 }
   0x4   :  { %12 = vsyncpa [#allocation3], 0  ;;  %v29_v2 = vld [vmem:[%s371_s0 + $0x8] sm:$0xff]  ;;  %v281_v4 = vmov 32.0   ;;  %v235_v23 = vld [vmem:[%s374_s3] sm:$0xff]  ;;  %vm171_vm8 = vcmask 523264  }
   0x5   :  { %v34_v3 = vsel %vm30_vm0, %v29_v2, 0.0  ;;  %249 = vrcp.f32 %v281_v4  ;;  %v236_v21 = vld [vmem:[%s374_s3 + $0x8] sm:$0xff]  ;;  %v245_v42 = vld [vmem:[%s372_s1] ss:$0 sm:$0xff]  ;;  %v240_v52 = vld [vmem:[%s376_s5 + $0x18] sm:$0xff]  ;;  %s197_s23 = sshll.u32 %s378_s7, 4  ;;  %s198_s23 = int_to_ptr.hbm [resolvable:$true] %s197_s23 }
   0x6   :  { %124 = vmatpush.bf16.msra.mxu0 %v236_v21  ;;  %v246_v47 = vld [vmem:[%s373_s2] ss:$0 sm:$0xff]  ;;  %179 = vmatpush.bf16.msra.mxu1 %v240_v52  ;;  %v239_v53 = vld [vmem:[%s376_s5 + $0x10] sm:$0xff]  ;;  %v238_v54 = vld [vmem:[%s376_s5 + $0x8] sm:$0xff]  ;;  %s283_s24 = smov 128   ;;  %s284_s25 = smov 8  }
   0x7   :  { %v237_v55 = vld [vmem:[%s376_s5] sm:$0xff]  ;;  %s282_s5 = smov [#allocation2]  }
   0x8   :  { %v247_v57 = vld [vmem:[%s375_s4] ss:$0 sm:$0xff]  ;;  %s195_s21 = sshll.u32 %s282_s5, 4  ;;  %s196_s21 = int_to_ptr.vmem [resolvable:$true] %s195_s21 }
   0xa   :  { %125 = vmatpush.bf16.msra.mxu0 %v235_v23  ;;  %180 = vmatpush.bf16.msra.mxu1 %v239_v53 }
   0xb   :  { %35 = vadd.xlane.f32.xlu0 %v34_v3  ;;  %v250_v5 = vpop.eup %249 }
   0xc   :  { %v38_v6 = vmul.f32 32.0, %v250_v5  ;;  %vm42_vm1 = vweird.f32 %v250_v5 }
   0xe   :  { %v39_v7 = vsub.f32 1.0, %v38_v6  ;;  %181 = vmatpush.bf16.msra.mxu1 %v238_v54 }
  0x10   :  { %v40_v8 = vmul.f32 %v250_v5, %v39_v7 }
  0x12   :  { %v41_v9 = vadd.f32 %v250_v5, %v40_v8  ;;  %182 = vmatpush.bf16.msra.mxu1 %v237_v55 }
  0x14   :  { %v43_v10 = vsel %vm42_vm1, %v250_v5, %v41_v9 }
  0x76   :  { %v33_v11 = vpop.xlane.xlu0 %32 }
  0x77   :  { %v44_v12 = vmul.f32 %v43_v10, %v33_v11 }
  0x79   :  { %v46_v13 = vsub.f32 %v28_v0, %v44_v12  ;;  %v248_v0 = vld [vmem:[%s377_s6] ss:$0 sm:$0xff] }
  0x7b   :  { %v48_v14 = vmul.f32 %v46_v13, %v46_v13 }
  0x7d   :  { %v50_v15 = vsel %vm30_vm0, %v48_v14, 0.0 }
  0x7e   :  { %51 = vadd.xlane.f32.xlu1 %v50_v15  ;;  %v36_v16 = vpop.xlane.xlu0 %35 }
  0x7f   :  { %v45_v17 = vmul.f32 %v43_v10, %v36_v16 }
  0x81   :  { %v47_v18 = vsub.f32 %v29_v2, %v45_v17 }
  0x83   :  { %v49_v19 = vmul.f32 %v47_v18, %v47_v18 }
  0x85   :  { %v53_v20 = vsel %vm30_vm0, %v49_v19, 0.0 }
  0x86   :  { %54 = vadd.xlane.f32.xlu1 %v53_v20 }
  0xf1   :  { %v52_v22 = vpop.xlane.xlu1 %51 }
  0xf2   :  { %v56_v24 = vmul.f32 %v52_v22, %v43_v10 }
  0xf4   :  { %v58_v25 = vadd.f32 1e-05, %v56_v24 }
  0xf6   :  { %251 = vrsqrt.f32 %v58_v25  ;;  %vm66_vm3 = vweird.f32 %v58_v25 }
  0xf9   :  { %v55_v26 = vpop.xlane.xlu1 %54 }
  0xfa   :  { %v57_v27 = vmul.f32 %v55_v26, %v43_v10 }
  0xfc   :  { %v252_v28 = vpop.eup %251  ;;  %v59_v29 = vadd.f32 1e-05, %v57_v27 }
  0xfd   :  { %v61_v30 = vmul.f32 %v252_v28, %v58_v25  ;;  %vm67_vm2 = vweird.f32 %v252_v28 }
  0xfe   :  { %253 = vrsqrt.f32 %v59_v29  ;;  %vm68_vm4 = vmor %vm66_vm3, %vm67_vm2  ;;  %vm76_vm6 = vweird.f32 %v59_v29 }
  0xff   :  { %v62_v31 = vmul.f32 %v252_v28, %v61_v30 }
 0x101   :  { %v63_v32 = vmul.f32 0.5, %v62_v31 }
 0x103   :  { %v64_v33 = vsub.f32 1.5, %v63_v32 }
 0x104   :  { %v254_v34 = vpop.eup %253 }
 0x105   :  { %v65_v35 = vmul.f32 %v252_v28, %v64_v33  ;;  %v71_v36 = vmul.f32 %v254_v34, %v59_v29  ;;  %vm77_vm5 = vweird.f32 %v254_v34 }
 0x106   :  { %vm78_vm7 = vmor %vm76_vm6, %vm77_vm5 }
 0x107   :  { %v72_v37 = vmul.f32 %v254_v34, %v71_v36  ;;  %v69_v38 = vsel %vm68_vm4, %v252_v28, %v65_v35 }
 0x108   :  { %v80_v41 = vmul.f32 %v69_v38, %v46_v13 }
 0x109   :  { %v73_v39 = vmul.f32 0.5, %v72_v37 }
 0x10a   :  { %v86_v46 = vmul.f32 %v245_v42, %v80_v41 }
 0x10b   :  { %v74_v40 = vsub.f32 1.5, %v73_v39 }
 0x10c   :  { %v92_v49 = vadd.f32 %v246_v47, %v86_v46 }
 0x10d   :  { %v75_v43 = vmul.f32 %v254_v34, %v74_v40 }
 0x10f   :  { %v79_v44 = vsel %vm78_vm7, %v254_v34, %v75_v43 }
 0x110   :  { %v81_v45 = vmul.f32 %v79_v44, %v47_v18 }
 0x112   :  { %v87_v48 = vmul.f32 %v245_v42, %v81_v45 }
 0x114   :  { %v93_v50 = vadd.f32 %v246_v47, %v87_v48 }
 0x116   :  { %v94_v51 = vpack.c.bf16 %v93_v50, %v92_v49 }
 0x118   :  { %217 = vmatmul.msk.bf16.vlgmr.msra.gmra.mxu0 %vm30_vm0, %v94_v51 }
 0x195   :  { %v127_v56 = vpop.f32.mrf.mxu0 }
 0x196   :  { %v128_v58 = vadd.f32 %v247_v57, %v127_v56 }
 0x198   :  { %v132_v61 = vmax.f32 %v128_v58, 0.0 }
 0x19d   :  { %v129_v59 = vpop.f32.mrf.mxu0 }
 0x19e   :  { %v130_v60 = vadd.f32 %v247_v57, %v129_v59 }
 0x1a0   :  { %v133_v62 = vmax.f32 %v130_v60, 0.0 }
 0x1a2   :  { %v134_v63 = vpack.c.bf16 %v133_v62, %v132_v61 }
 0x1a4   :  { %234 = vmatmul.msk.bf16.vlgmr.msra.gmra.mxu1 %vm171_vm8, %v134_v63 }
 0x221   :  { %v184_v1 = vpop.f32.mrf.mxu1 }
 0x222   :  { %v185_v2 = vadd.f32 %v248_v0, %v184_v1 }
 0x224   :  { %189 = vst.msk [vmem:[#allocation2] sm:$0xff] %vm30_vm0, %v185_v2 }
 0x229   :  { %v186_v3 = vpop.f32.mrf.mxu1 }
 0x22a   :  { %v187_v4 = vadd.f32 %v248_v0, %v186_v3 }
 0x22c   :  { %190 = vst.msk [vmem:[#allocation2 + $0x8] sm:$0xff] %vm30_vm0, %v187_v4 }
 0x22d   :  { %203 = dma.vmem_to_hbm [thread:$0]  %s196_s21, 256, %s198_s23, [#allocation3], %s283_s24, %s283_s24, %s284_s25  }
 0x22e   :  { %279 = dma.done.wait [#allocation3], 256  }
 0x22f   :  { %280 = vsyncadd [#allocation3], 4294967040 }
 0x230   :  { %208 = vsyncpa [#allocation3], 1 }

</bundles_post_ra>
